<compile_context>
chip_gen: v7x
topology: tpu7x:2x2x1
jax: 0.10.0
libtpu: 0.0.40
codegen_flags: <defaults>
</compile_context>

<pallas_src>
import functools
import math

import jax
import jax.numpy as jnp
from jax.experimental import pallas as pl
from jax.experimental.pallas import tpu as pltpu


def _int_pow(t, n):
    """t**n for integer n >= 1 via exponentiation-by-squaring (pure VPU)."""
    result = None
    base = t
    while n > 0:
        if n & 1:
            result = base if result is None else result * base
        n >>= 1
        if n > 0:
            base = base * base
    return result


def _focal_weight(t, gamma):
    g_int = int(gamma)
    if float(g_int) == float(gamma) and 1 <= g_int <= 64:
        return _int_pow(t, g_int)
    return t ** gamma          # fractional / negative gamma fallback (exp/log pow)


def _focal_loss_kernel(logit_ref, y_ref, out_ref, acc_ref, *,
                       gamma, use_sigmoid, lanes_4d, extent, tile, T, need_mask):
    # grid = (P, NB, T): p = core / spatial-range split, b = batch tile,
    # s = spatial tile within this range (reduction axis, innermost).
    p = pl.program_id(0)
    s = pl.program_id(2)

    if lanes_4d:
        @pl.when(s == 0)
        def _():
            acc_ref[...] = jnp.zeros_like(acc_ref)
    else:
        @pl.when(s == 0)
        def _():
            out_ref[...] = jnp.zeros_like(out_ref)

    x = logit_ref[...].astype(jnp.float32)   # (TB, C, TR, 128) or (B, C, TS)
    y = y_ref[...].astype(jnp.float32)

    if need_mask:
        # Mask rows (4-D layout) / lanes (3-D layout) beyond the true spatial
        # extent.  Both logit and y_true must be masked: tail positions can
        # hold arbitrary bits (NaN/Inf) that 0 * Inf would still propagate.
        idx = jax.lax.broadcasted_iota(jnp.int32, x.shape, 2)
        g = p * T + s                      # unclamped global tile index
        valid = (g * tile + idx) < extent
        x = jnp.where(valid, x, 0.0)
        y = jnp.where(valid, y, 0.0)

    need_prob = gamma != 0.0
    if use_sigmoid:
        e = jnp.exp(-jnp.abs(x))                               # single exp, reused
        log_p = jnp.minimum(x, 0.0) - jnp.log1p(e)             # log-sigmoid
        if need_prob:
            inv = pl.reciprocal(1.0 + e, approx=False)
            prob = jnp.where(x >= 0.0, inv, e * inv)           # sigmoid from e
    else:
        m = jnp.max(x, axis=1, keepdims=True)                  # class axis = 1
        z = x - m
        e = jnp.exp(z)
        denom = jnp.sum(e, axis=1, keepdims=True)
        log_p = z - jnp.log(denom)
        if need_prob:
            prob = e * pl.reciprocal(denom, approx=False)      # 1 recip / column

    pix = -(log_p * y)
    if need_prob:
        pix = _focal_weight(1.0 - y * prob, gamma) * pix

    if lanes_4d:
        # Sum only over the row axis each step; keep the 128-lane cross-lane
        # reduce + narrow (C-lane) output store for the final step.
        acc_ref[...] += jnp.sum(pix, axis=2)                   # (TB, C, 128)

        @pl.when(s == T - 1)
        def _():
            out_ref[...] = jnp.sum(acc_ref[...], axis=-1)[jnp.newaxis]
    else:
        out_ref[...] += jnp.sum(pix, axis=-1)[jnp.newaxis]     # (1, B, C)


def _vmem_capacity_bytes():
    try:
        v = int(pltpu.get_tpu_info().vmem_capacity_bytes)
        if v > 0:
            return v
    except Exception:
        pass
    return 128 * 1024 * 1024


def _num_tensorcores():
    try:
        info = pltpu.get_tpu_info()
        for name in ("num_cores", "core_count", "num_tensorcores",
                     "tensorcore_count", "cores_per_chip"):
            v = getattr(info, name, None)
            if isinstance(v, int) and 1 <= v <= 16:
                return v
    except Exception:
        pass
    return 1


def focal_loss(logit, y_true, *, sigmoid=False, gamma=0.0,
               class_weights=None, weight=None,
               block_budget_bytes=None, vmem_limit_bytes=None):
    """Pallas implementation of FocalLoss.forward.  Returns a scalar float32."""
    if logit.shape != y_true.shape:
        raise ValueError("Shape of predicted and true labels do not match.")
    # TODO(synk): runtime value check (y_true within [0, 1]) omitted — cannot
    #             raise Python exceptions on traced device values.

    B, C = logit.shape[0], logit.shape[1]
    S = int(math.prod(logit.shape[2:])) if logit.ndim > 2 else 1
    use_sigmoid = bool(sigmoid) or (C == 1)
    if class_weights is not None and len(class_weights) != C:
        raise ValueError("The number of class weights and classes do not match.")

    # Generation-aware VMEM budgeting (v7x: 64 MiB VMEM / 2 TensorCores).
    small_vmem = _vmem_capacity_bytes() <= 64 * 1024 * 1024
    if block_budget_bytes is None:
        block_budget_bytes = (2 if small_vmem else 4) * 1024 * 1024
    if vmem_limit_bytes is None:
        vmem_limit_bytes = (40 if small_vmem else 64) * 1024 * 1024
    cores = _num_tensorcores()

    logit_f = logit.reshape(B, C, S)       # native dtype, no copies / padding
    y_f = y_true.reshape(B, C, S)
    lanes_4d = (S % 128 == 0)

    if lanes_4d:
        # (B, C, R, 128): full (8, 128) vreg tiles regardless of C.
        R = S // 128
        inputs = (logit_f.reshape(B, C, R, 128), y_f.reshape(B, C, R, 128))
        row8_bytes = C * 8 * 128 * 4       # f32 bytes of one 8-row block / item
        if B < 16 or B * row8_bytes <= block_budget_bytes:
            TB = B
        else:                              # large-C robustness: tile the batch
            TB = min(B, max(8, ((block_budget_bytes // row8_bytes) // 8) * 8))
        NB = pl.cdiv(B, TB)
        tr_cap = max(8, ((block_budget_bytes // (TB * C * 128 * 4)) // 8) * 8)
        TR = R if R <= tr_cap else tr_cap
        n_blocks = pl.cdiv(R, TR)
        extent, tile = R, TR
        block = (TB, C, TR, 128)
    else:
        # Ragged spatial extent: (B, C, TS) layout + in-kernel lane mask.
        # TODO(synk): B is not tiled on this (uncommon) fallback path.
        TB, NB = B, 1
        c_pad = -(-C // 8) * 8             # sublane padding of the f32 working set
        ts_cap = max(128, ((block_budget_bytes // (B * c_pad * 4)) // 128) * 128)
        TS = S if S <= ts_cap else ts_cap
        n_blocks = pl.cdiv(S, TS)
        inputs = (logit_f, y_f)
        extent, tile = S, TS
        block = (B, C, TS)

    # Split the spatial range across TensorCores only when there is >1 core.
    P = cores if (cores > 1 and n_blocks >= cores) else 1
    T = pl.cdiv(n_blocks, P)
    need_mask = (P * T * tile) != extent
    last = n_blocks - 1

    if lanes_4d:
        in_spec = pl.BlockSpec(
            block, lambda p, b, s: (b, 0, jnp.minimum(p * T + s, last), 0))
    else:
        in_spec = pl.BlockSpec(
            block, lambda p, b, s: (0, 0, jnp.minimum(p * T + s, last)))
    out_spec = pl.BlockSpec((1, TB, C), lambda p, b, s: (p, b, 0))

    kern = functools.partial(
        _focal_loss_kernel, gamma=float(gamma), use_sigmoid=use_sigmoid,
        lanes_4d=lanes_4d, extent=extent, tile=tile, T=T, need_mask=need_mask)

    def build(dim_sems):
        return pl.pallas_call(
            kern,
            out_shape=jax.ShapeDtypeStruct((P, B, C), jnp.float32),
            grid_spec=pltpu.PrefetchScalarGridSpec(
                num_scalar_prefetch=0,
                grid=(P, NB, T),
                in_specs=[in_spec, in_spec],
                out_specs=out_spec,
                scratch_shapes=[pltpu.VMEM((TB, C, 128), jnp.float32)]),
            compiler_params=pltpu.CompilerParams(
                dimension_semantics=dim_sems,
                vmem_limit_bytes=vmem_limit_bytes),
        )

    if P > 1:
        try:   # explicit per-TensorCore split on multi-core chips (v7x)
            partial_sums = build(
                (pltpu.CORE_PARALLEL, pltpu.ARBITRARY, pltpu.ARBITRARY))(*inputs)
        except Exception:
            partial_sums = build(("parallel", "arbitrary", "arbitrary"))(*inputs)
    else:
        partial_sums = build(("arbitrary", "arbitrary", "arbitrary"))(*inputs)

    # Tiny (P, B, C) -> scalar epilogue in plain JAX: spatial mean, class
    # weights, per-item weights, batch mean.
    cls = jnp.sum(partial_sums, axis=0) / jnp.float32(S)          # (B, C)
    if class_weights is not None:
        cls = cls * jnp.asarray(class_weights, jnp.float32).reshape(1, C)
    inst = jnp.sum(cls, axis=1)                                    # (B,)
    if weight is not None:
        inst = inst * jnp.asarray(weight, jnp.float32).reshape(B)
    return jnp.mean(inst)


def focal_loss_ref(logit, y_true, *, sigmoid=False, gamma=0.0,
                   class_weights=None, weight=None):
    """Pure-JAX reference mirroring the PyTorch module."""
    B, C = logit.shape[0], logit.shape[1]
    use_sigmoid = bool(sigmoid) or (C == 1)
    logit = logit.astype(jnp.float32)
    y_true = y_true.astype(jnp.float32)
    if use_sigmoid:
        y_pred = jax.nn.sigmoid(logit)
        log_y_pred = jax.nn.log_sigmoid(logit)
    else:
        y_pred = jax.nn.softmax(logit, axis=1)
        log_y_pred = jax.nn.log_softmax(logit, axis=1)
    yt = y_true.reshape(B, C, -1)
    yp = y_pred.reshape(B, C, -1)
    lp = log_y_pred.reshape(B, C, -1)
    ce = -(lp * yt)
    fw = (1.0 - yt * yp) ** gamma if gamma != 0.0 else 1.0
    cls = jnp.mean(fw * ce, axis=-1)
    if class_weights is not None:
        cls = cls * jnp.asarray(class_weights, jnp.float32)[None, :]
    inst = jnp.sum(cls, axis=1)
    if weight is not None:
        inst = inst * jnp.asarray(weight, jnp.float32)
    return jnp.mean(inst)


if __name__ == "__main__":
    key = jax.random.PRNGKey(0)
    k1, k2, k3 = jax.random.split(key, 3)

    B, C, H, W = 2, 4, 16, 16                       # S = 256 -> lane-dense 4-D path
    logit = jax.random.normal(k1, (B, C, H, W), jnp.float32)
    y_true = jax.random.uniform(k2, (B, C, H, W), jnp.float32)   # soft labels in [0,1]
    weight = jax.random.uniform(k3, (B,), jnp.float32) + 0.5
    class_weights = [1.0, 2.0, 0.5, 1.5]

    def check(out, ref, name):
        assert jnp.allclose(out, ref, rtol=1e-5, atol=1e-5), (name, out, ref)

    # 1) softmax path, integer gamma, class + per-item weights
    out = jax.block_until_ready(focal_loss(
        logit, y_true, gamma=2.0, class_weights=class_weights, weight=weight))
    ref = focal_loss_ref(logit, y_true, gamma=2.0,
                         class_weights=class_weights, weight=weight)
    check(out, ref, "softmax+gamma2")

    # 2) default path (gamma=0, no weights) — y_pred skipped in-kernel
    check(jax.block_until_ready(focal_loss(logit, y_true)),
          focal_loss_ref(logit, y_true), "gamma0")

    # 3) sigmoid path, fractional gamma (pow fallback, shared-exp sigmoid)
    check(jax.block_until_ready(focal_loss(logit, y_true, sigmoid=True, gamma=1.5)),
          focal_loss_ref(logit, y_true, sigmoid=True, gamma=1.5), "sigmoid")

    # 4) bf16 inputs — native-dtype DMA, in-kernel f32 upcast
    check(jax.block_until_ready(focal_loss(
              logit.astype(jnp.bfloat16), y_true.astype(jnp.bfloat16), gamma=2.0)),
          focal_loss_ref(logit.astype(jnp.bfloat16), y_true.astype(jnp.bfloat16),
                         gamma=2.0), "bf16")

    # 5) ragged spatial extent (S = 300): 3-D fallback layout + lane mask,
    #    tiny forced tiles -> multi-tile accumulation + clamped-tile path
    Hr, Wr = 15, 20
    logit_r = jax.random.normal(k1, (B, C, Hr, Wr), jnp.float32)
    y_r = jax.random.uniform(k2, (B, C, Hr, Wr), jnp.float32)
    check(jax.block_until_ready(focal_loss(
              logit_r, y_r, gamma=2.0, class_weights=class_weights, weight=weight,
              block_budget_bytes=B * C * 4 * 128)),
          focal_loss_ref(logit_r, y_r, gamma=2.0,
                         class_weights=class_weights, weight=weight), "ragged")

    # 6) 4-D path with several row blocks + row mask + odd integer gamma
    #    (exercises the (TB, C, 128) scratch accumulation and finalize)
    Hm, Wm = 32, 40                                  # S = 1280 -> R = 10 rows
    logit_m = jax.random.normal(k1, (B, C, Hm, Wm), jnp.float32)
    y_m = jax.random.uniform(k2, (B, C, Hm, Wm), jnp.float32)
    check(jax.block_until_ready(focal_loss(
              logit_m, y_m, gamma=3.0, weight=weight,
              block_budget_bytes=B * C * 8 * 128 * 4)),
          focal_loss_ref(logit_m, y_m, gamma=3.0, weight=weight), "multiblock")

    print("KERNEL_OK")
</pallas_src>

<mosaic_0001>
module attributes {stable_mosaic.version = 11 : i64} {
  func.func @_focal_loss_kernel(%arg0: i32, %arg1: i32, %arg2: i32, %arg3: memref<2x4x2x128xf32, #tpu.memory_space<vmem>>, %arg4: memref<2x4x2x128xf32, #tpu.memory_space<vmem>>, %arg5: memref<1x2x4xf32, #tpu.memory_space<vmem>>, %arg6: memref<2x4x128xf32, #tpu.memory_space<vmem>>) attributes {dimension_semantics = [#tpu.dimension_semantics<arbitrary>, #tpu.dimension_semantics<arbitrary>, #tpu.dimension_semantics<arbitrary>], iteration_bounds = array<i64: 1, 1, 1>, scalar_prefetch = 0 : i64, scratch_operands = 1 : i64, tpu.core_type = #tpu.core_type<tc>, window_params = [{transform_indices = @transform_0, window_bounds = array<i64: 2, 4, 2, 128>}, {transform_indices = @transform_1, window_bounds = array<i64: 2, 4, 2, 128>}, {transform_indices = @transform_2, window_bounds = array<i64: 1, 2, 4>}]} {
    %c0_i32 = arith.constant 0 : i32
    %0 = arith.cmpi eq, %arg2, %c0_i32 : i32
    %1 = arith.extui %0 : i1 to i32
    %c0_i32_0 = arith.constant 0 : i32
    %2 = arith.cmpi ne, %1, %c0_i32_0 : i32
    scf.if %2 {
      %cst_20 = arith.constant 0.000000e+00 : f32
      %33 = vector.broadcast %cst_20 : f32 to vector<2x4x128xf32>
      %c0_21 = arith.constant 0 : index
      %c0_22 = arith.constant 0 : index
      %c0_23 = arith.constant 0 : index
      %34 = vector.load %arg6[%c0_21, %c0_22, %c0_23] : memref<2x4x128xf32, #tpu.memory_space<vmem>>, vector<2x4x128xf32>
      tpu.vector_store %arg6[%c0_21, %c0_22, %c0_23], %33 {strides = array<i32>} : memref<2x4x128xf32, #tpu.memory_space<vmem>>, vector<2x4x128xf32>,
    } else {
    }
    %c0 = arith.constant 0 : index
    %c0_1 = arith.constant 0 : index
    %c0_2 = arith.constant 0 : index
    %c0_3 = arith.constant 0 : index
    %3 = vector.load %arg3[%c0, %c0_1, %c0_2, %c0_3] : memref<2x4x2x128xf32, #tpu.memory_space<vmem>>, vector<2x4x2x128xf32>
    %c0_4 = arith.constant 0 : index
    %c0_5 = arith.constant 0 : index
    %c0_6 = arith.constant 0 : index
    %c0_7 = arith.constant 0 : index
    %4 = vector.load %arg4[%c0_4, %c0_5, %c0_6, %c0_7] : memref<2x4x2x128xf32, #tpu.memory_space<vmem>>, vector<2x4x2x128xf32>
    %cst = arith.constant dense<0xFF800000> : vector<2x2x128xf32>
    %5 = vector.multi_reduction <maximumf>, %3, %cst [1] : vector<2x4x2x128xf32> to vector<2x2x128xf32>
    %6 = vector.shape_cast %5 : vector<2x2x128xf32> to vector<2x1x2x128xf32>
    %7 = vector.broadcast %6 : vector<2x1x2x128xf32> to vector<2x4x2x128xf32>
    %8 = arith.subf %3, %7 : vector<2x4x2x128xf32>
    %9 = math.exp %8 : vector<2x4x2x128xf32>
    %cst_8 = arith.constant dense<0.000000e+00> : vector<2x2x128xf32>
    %10 = vector.multi_reduction <add>, %9, %cst_8 [1] : vector<2x4x2x128xf32> to vector<2x2x128xf32>
    %11 = vector.shape_cast %10 : vector<2x2x128xf32> to vector<2x1x2x128xf32>
    %12 = math.log %11 : vector<2x1x2x128xf32>
    %13 = vector.broadcast %12 : vector<2x1x2x128xf32> to vector<2x4x2x128xf32>
    %14 = arith.subf %8, %13 : vector<2x4x2x128xf32>
    %15 = tpu.reciprocal %11 : vector<2x1x2x128xf32> -> vector<2x1x2x128xf32>
    %16 = vector.broadcast %15 : vector<2x1x2x128xf32> to vector<2x4x2x128xf32>
    %17 = arith.mulf %9, %16 : vector<2x4x2x128xf32>
    %18 = arith.mulf %14, %4 : vector<2x4x2x128xf32>
    %cst_9 = arith.constant 0.000000e+00 : f32
    %19 = vector.broadcast %cst_9 : f32 to vector<2x4x2x128xf32>
    %20 = arith.subf %19, %18 : vector<2x4x2x128xf32>
    %21 = arith.mulf %4, %17 : vector<2x4x2x128xf32>
    %cst_10 = arith.constant 1.000000e+00 : f32
    %22 = vector.broadcast %cst_10 : f32 to vector<2x4x2x128xf32>
    %23 = arith.subf %22, %21 : vector<2x4x2x128xf32>
    %24 = arith.mulf %23, %23 : vector<2x4x2x128xf32>
    %25 = arith.mulf %24, %20 : vector<2x4x2x128xf32>
    %c0_11 = arith.constant 0 : index
    %c0_12 = arith.constant 0 : index
    %c0_13 = arith.constant 0 : index
    %26 = vector.load %arg6[%c0_11, %c0_12, %c0_13] : memref<2x4x128xf32, #tpu.memory_space<vmem>>, vector<2x4x128xf32>
    %cst_14 = arith.constant dense<0.000000e+00> : vector<2x4x128xf32>
    %27 = vector.multi_reduction <add>, %25, %cst_14 [2] : vector<2x4x2x128xf32> to vector<2x4x128xf32>
    %28 = arith.addf %26, %27 : vector<2x4x128xf32>
    %c0_15 = arith.constant 0 : index
    %c0_16 = arith.constant 0 : index
    %c0_17 = arith.constant 0 : index
    %29 = vector.load %arg6[%c0_15, %c0_16, %c0_17] : memref<2x4x128xf32, #tpu.memory_space<vmem>>, vector<2x4x128xf32>
    tpu.vector_store %arg6[%c0_15, %c0_16, %c0_17], %28 {strides = array<i32>} : memref<2x4x128xf32, #tpu.memory_space<vmem>>, vector<2x4x128xf32>,
    %c0_i32_18 = arith.constant 0 : i32
    %30 = arith.cmpi eq, %arg2, %c0_i32_18 : i32
    %31 = arith.extui %30 : i1 to i32
    %c0_i32_19 = arith.constant 0 : i32
    %32 = arith.cmpi ne, %31, %c0_i32_19 : i32
    scf.if %32 {
      %c0_20 = arith.constant 0 : index
      %c0_21 = arith.constant 0 : index
      %c0_22 = arith.constant 0 : index
      %33 = vector.load %arg6[%c0_20, %c0_21, %c0_22] : memref<2x4x128xf32, #tpu.memory_space<vmem>>, vector<2x4x128xf32>
      %cst_23 = arith.constant dense<0.000000e+00> : vector<2x4xf32>
      %34 = vector.multi_reduction <add>, %33, %cst_23 [2] : vector<2x4x128xf32> to vector<2x4xf32>
      %35 = vector.shape_cast %34 : vector<2x4xf32> to vector<1x2x4xf32>
      %c0_24 = arith.constant 0 : index
      %c0_25 = arith.constant 0 : index
      %c0_26 = arith.constant 0 : index
      %36 = vector.load %arg5[%c0_24, %c0_25, %c0_26] : memref<1x2x4xf32, #tpu.memory_space<vmem>>, vector<1x2x4xf32>
      tpu.vector_store %arg5[%c0_24, %c0_25, %c0_26], %35 {strides = array<i32>} : memref<1x2x4xf32, #tpu.memory_space<vmem>>, vector<1x2x4xf32>,
    } else {
    }
    return
  }
  func.func @transform_0(%arg0: i32, %arg1: i32, %arg2: i32) -> (i32, i32, i32, i32) {
    %c1_i32 = arith.constant 1 : i32
    %0 = arith.muli %arg0, %c1_i32 : i32
    %1 = arith.addi %0, %arg2 : i32
    %c0_i32 = arith.constant 0 : i32
    %2 = arith.minsi %1, %c0_i32 : i32
    %c0_i32_0 = arith.constant 0 : i32
    %c0_i32_1 = arith.constant 0 : i32
    %c0_i32_2 = arith.constant 0 : i32
    return %arg1, %c0_i32_0, %2, %c0_i32_1 : i32, i32, i32, i32
  }
  func.func @transform_1(%arg0: i32, %arg1: i32, %arg2: i32) -> (i32, i32, i32, i32) {
    %c1_i32 = arith.constant 1 : i32
    %0 = arith.muli %arg0, %c1_i32 : i32
    %1 = arith.addi %0, %arg2 : i32
    %c0_i32 = arith.constant 0 : i32
    %2 = arith.minsi %1, %c0_i32 : i32
    %c0_i32_0 = arith.constant 0 : i32
    %c0_i32_1 = arith.constant 0 : i32
    %c0_i32_2 = arith.constant 0 : i32
    return %arg1, %c0_i32_0, %2, %c0_i32_1 : i32, i32, i32, i32
  }
  func.func @transform_2(%arg0: i32, %arg1: i32, %arg2: i32) -> (i32, i32, i32) {
    %c0_i32 = arith.constant 0 : i32
    %c0_i32_0 = arith.constant 0 : i32
    return %arg0, %arg1, %c0_i32 : i32, i32, i32
  }
}

</mosaic_0001>

<bundles_post_ra>
// kernel: tpu_custom_call.1
= control target key start
LH: loop header
LB: loop body
LE: loop exit
PB: predicated region body
PF: predicated region fallthrough
CT: control target
= control target key end

     0   :  { %7 = vsyncpa [#allocation4], 0  ;;  %s558_s0 = inlined_call_operand.hbm [shape: f32[2,4,2,128], index: 0, kind: input, shape index: {}]   ;;  %s559_s1 = inlined_call_operand.hbm [shape: f32[2,4,2,128], index: 1, kind: input, shape index: {}]   ;;  %s560_s2 = inlined_call_operand.hbm [shape: f32[1,2,4], index: 2, kind: output, shape index: {}]  }
   0x1   :  { %8 = vsyncpa [#allocation7], 0 }
   0x2   :  { %9 = vsyncpa [#allocation5], 0  ;;  %s432_s9 = smov [#allocation3]   ;;  %s360_s13 = scalar_lea.hbm %s558_s0, 256 }
   0x3   :  { %s20_s10 = sshll.u32 %s432_s9, 4  ;;  %p361_p0 = scmp.ne.s32.totalorder %s558_s0, %s360_s13  ;;  %s21_s10 = int_to_ptr.vmem [resolvable:$true] %s20_s10 }
   0x4   :  { %p364_p1 = scmp.lt.u32.totalorder %s360_s13, %s558_s0 }
   0x6   :  { %p366_p2 = pnand %p364_p1, %p361_p0 }
   0x8   :  { %369 = shalt.err (!%p366_p2)
}
   0x9   :  { %s370_s18 = scalar_lea.vmem %s21_s10, 256  ;;  %p375_p4 = scmp.lt.s32.totalorder %s21_s10, %s21_s10 }
   0xa   :  { %p371_p3 = scmp.ne.s32.totalorder %s21_s10, %s370_s18  ;;  %p376_p5 = scmp.lt.s32.totalorder %s370_s18, %s370_s18 }
   0xc   :  { %p377_p6 = por %p376_p5, %p375_p4 }
   0xe   :  { %p378_p7 = pnand %p377_p6, %p371_p3 }
  0x10   :  { %381 = shalt.err (!%p378_p7)
}
  0x11   :  { %s433_s19 = smov 32   ;;  %s434_s20 = smov 2  }
  0x12   :  { %26 = dma.hbm_to_vmem [thread:$0]  %s558_s0, 256, %s21_s10, [#allocation4], %s433_s19, %s433_s19, %s434_s20  }
  0x13   :  { %s435_s23 = smov [#allocation6]   ;;  %s382_s27 = scalar_lea.hbm %s559_s1, 256 }
  0x14   :  { %s37_s24 = sshll.u32 %s435_s23, 4  ;;  %p383_p8 = scmp.ne.s32.totalorder %s559_s1, %s382_s27  ;;  %s38_s24 = int_to_ptr.vmem [resolvable:$true] %s37_s24 }
  0x15   :  { %p386_p9 = scmp.lt.u32.totalorder %s382_s27, %s559_s1 }
  0x17   :  { %p388_p10 = pnand %p386_p9, %p383_p8 }
  0x19   :  { %391 = shalt.err (!%p388_p10)
}
  0x1a   :  { %s392_s4 = scalar_lea.vmem %s38_s24, 256  ;;  %p397_p12 = scmp.lt.s32.totalorder %s38_s24, %s38_s24 }
  0x1b   :  { %p393_p11 = scmp.ne.s32.totalorder %s38_s24, %s392_s4  ;;  %p398_p13 = scmp.lt.s32.totalorder %s392_s4, %s392_s4 }
  0x1d   :  { %p399_p0 = por %p398_p13, %p397_p12 }
  0x1f   :  { %p400_p1 = pnand %p399_p0, %p393_p11 }
  0x21   :  { %403 = shalt.err (!%p400_p1)
}
  0x22   :  { %43 = dma.hbm_to_vmem [thread:$0]  %s559_s1, 256, %s38_s24, [#allocation7], %s433_s19, %s433_s19, %s434_s20  }
  0x23   :  { %426 = dma.done.wait [#allocation4], 256  }
  0x24   :  { %427 = vsyncadd [#allocation4], 4294967040 }
  0x25   :  { %428 = dma.done.wait [#allocation7], 256  }
  0x26   :  { %429 = vsyncadd [#allocation7], 4294967040  ;;  %v436_v0 = vmov 0.0   ;;  %vm78_vm0 = vcmask 1041408   ;;  %v62_v1 = vld [vmem:[#allocation3] sm:$0x3] }
  0x27   :  { %60 = vst [vmem:[#allocation2] sm:$0xf] %v436_v0  ;;  %61 = vst [vmem:[#allocation2 + $0x4] sm:$0xf] %v436_v0  ;;  %v63_v2 = vld [vmem:[#allocation3 + $0x2] sm:$0x3] }
  0x28   :  { %v64_v3 = vld [vmem:[#allocation3 + $0x4] sm:$0x3]  ;;  %v65_v4 = vld [vmem:[#allocation3 + $0x6] sm:$0x3]  ;;  %v79_v5 = vsel %vm78_vm0, %v62_v1, -inf  ;;  %v80_v6 = vsel %vm78_vm0, %v63_v2, -inf }
  0x29   :  { %v81_v7 = vsel %vm78_vm0, %v64_v3, -inf  ;;  %v83_v8 = vsel %vm78_vm0, %v65_v4, -inf  ;;  %v66_v9 = vld [vmem:[#allocation3 + $0x8] sm:$0x3]  ;;  %v67_v12 = vld [vmem:[#allocation3 + $0xa] sm:$0x3] }
  0x2a   :  { %v82_v10 = vmax.f32 %v79_v5, %v81_v7  ;;  %v84_v11 = vmax.f32 %v80_v6, %v83_v8  ;;  %v68_v13 = vld [vmem:[#allocation3 + $0xc] sm:$0x3]  ;;  %v69_v14 = vld [vmem:[#allocation3 + $0xe] sm:$0x3]  ;;  %v86_v16 = vsel %vm78_vm0, %v66_v9, -inf  ;;  %v87_v17 = vsel %vm78_vm0, %v67_v12, -inf }
  0x2b   :  { %v88_v18 = vsel %vm78_vm0, %v68_v13, -inf  ;;  %v90_v20 = vsel %vm78_vm0, %v69_v14, -inf  ;;  %v70_v62 = vld [vmem:[#allocation6] sm:$0x3]  ;;  %v71_v63 = vld [vmem:[#allocation6 + $0x2] sm:$0x3] }
  0x2c   :  { %v85_v15 = vmax.f32 %v82_v10, %v84_v11  ;;  %v89_v19 = vmax.f32 %v86_v16, %v88_v18  ;;  %v91_v25 = vmax.f32 %v87_v17, %v90_v20  ;;  %vm267_vm1 = vcmask 1041409   ;;  %s437_s1 = smov [#allocation8]  }
  0x2d   :  { %vm269_vm2 = vcmask 1042434   ;;  %vm271_vm3 = vcmask 1043459   ;;  %vm287_vm4 = vcmask 1043456   ;;  %s316_s6 = sshll.u32 %s437_s1, 4  ;;  %vm308_vm5 = vcmask 25600   ;;  %s317_s6 = int_to_ptr.vmem [resolvable:$true] %s316_s6 }
  0x2e   :  { %v485_v21 = vsub.f32 %v62_v1, %v85_v15  ;;  %v487_v22 = vsub.f32 %v63_v2, %v85_v15  ;;  %v489_v23 = vsub.f32 %v64_v3, %v85_v15  ;;  %v491_v24 = vsub.f32 %v65_v4, %v85_v15  ;;  %v72_v1 = vld [vmem:[#allocation6 + $0x4] sm:$0x3]  ;;  %v73_v2 = vld [vmem:[#allocation6 + $0x6] sm:$0x3]  ;;  %s404_s7 = scalar_lea.vmem %s317_s6, 32  ;;  %p409_p3 = scmp.lt.s32.totalorder %s317_s6, %s317_s6 }
  0x2f   :  { %v92_v30 = vmax.f32 %v89_v19, %v91_v25  ;;  %p405_p2 = scmp.ne.s32.totalorder %s317_s6, %s404_s7  ;;  %p410_p4 = scmp.lt.s32.totalorder %s404_s7, %s404_s7 }
  0x30   :  { %v101_v26 = vmul.f32 1.442695, %v485_v21  ;;  %v103_v27 = vmul.f32 1.442695, %v487_v22  ;;  %v105_v28 = vmul.f32 1.442695, %v489_v23 }
  0x31   :  { %v107_v29 = vmul.f32 1.442695, %v491_v24  ;;  %v497_v31 = vsub.f32 %v66_v9, %v92_v30  ;;  %v499_v32 = vsub.f32 %v67_v12, %v92_v30  ;;  %v501_v33 = vsub.f32 %v68_v13, %v92_v30  ;;  %p411_p5 = por %p410_p4, %p409_p3 }
  0x32   :  { %336 = vpow2.f32 %v101_v26  ;;  %v503_v34 = vsub.f32 %v69_v14, %v92_v30 }
  0x33   :  { %338 = vpow2.f32 %v103_v27  ;;  %v109_v35 = vmul.f32 1.442695, %v497_v31  ;;  %v111_v36 = vmul.f32 1.442695, %v499_v32  ;;  %v113_v37 = vmul.f32 1.442695, %v501_v33  ;;  %p412_p6 = pnand %p411_p5, %p405_p2 }
  0x34   :  { %340 = vpow2.f32 %v105_v28  ;;  %v115_v38 = vmul.f32 1.442695, %v503_v34 }
  0x35   :  { %342 = vpow2.f32 %v107_v29 }
  0x36   :  { %344 = vpow2.f32 %v109_v35 }
  0x37   :  { %346 = vpow2.f32 %v111_v36 }
  0x38   :  { %348 = vpow2.f32 %v113_v37 }
  0x39   :  { %350 = vpow2.f32 %v115_v38 }
  0x3c   :  { %v337_v39 = vpop.eup %336 }
  0x3d   :  { %v339_v40 = vpop.eup %338  ;;  %v117_v41 = vsel %vm78_vm0, %v337_v39, 0.0 }
  0x3e   :  { %v341_v42 = vpop.eup %340  ;;  %v118_v43 = vsel %vm78_vm0, %v339_v40, 0.0 }
  0x3f   :  { %v343_v44 = vpop.eup %342  ;;  %v119_v45 = vadd.f32 %v118_v43, %v117_v41  ;;  %v120_v46 = vsel %vm78_vm0, %v341_v42, 0.0 }
  0x40   :  { %v122_v47 = vsel %vm78_vm0, %v343_v44, 0.0  ;;  %v345_v48 = vpop.eup %344 }
  0x41   :  { %v121_v49 = vadd.f32 %v120_v46, %v119_v45  ;;  %v347_v50 = vpop.eup %346  ;;  %v124_v51 = vsel %vm78_vm0, %v345_v48, 0.0  ;;  %v74_v46 = vld [vmem:[#allocation6 + $0x8] sm:$0x3] }
  0x42   :  { %v349_v52 = vpop.eup %348  ;;  %v125_v54 = vsel %vm78_vm0, %v347_v50, 0.0 }
  0x43   :  { %v123_v53 = vadd.f32 %v122_v47, %v121_v49  ;;  %v515_v55 = vpop.eup %350  ;;  %v126_v56 = vadd.f32 %v125_v54, %v124_v51  ;;  %v127_v57 = vsel %vm78_vm0, %v349_v52, 0.0 }
  0x44   :  { %v129_v58 = vsel %vm78_vm0, %v515_v55, 0.0 }
  0x45   :  { %352 = vlog2.f32 %v123_v53  ;;  %v128_v59 = vadd.f32 %v127_v57, %v126_v56 }
  0x46   :  { %354 = vrcp.f32 %v123_v53 }
  0x47   :  { %v130_v60 = vadd.f32 %v129_v58, %v128_v59 }
  0x49   :  { %356 = vlog2.f32 %v130_v60 }
  0x4a   :  { %358 = vrcp.f32 %v130_v60 }
  0x4f   :  { %v353_v61 = vpop.eup %352 }
  0x50   :  { %v355_v0 = vpop.eup %354  ;;  %v132_v3 = vmul.f32 0.6931472, %v353_v61 }
  0x51   :  { %v145_v4 = vmul.f32 %v355_v0, %v337_v39  ;;  %v146_v5 = vmul.f32 %v355_v0, %v339_v40  ;;  %v147_v6 = vmul.f32 %v355_v0, %v341_v42  ;;  %v148_v7 = vmul.f32 %v355_v0, %v343_v44 }
  0x52   :  { %v135_v8 = vsub.f32 %v485_v21, %v132_v3  ;;  %v136_v9 = vsub.f32 %v487_v22, %v132_v3  ;;  %v137_v10 = vsub.f32 %v489_v23, %v132_v3  ;;  %v138_v11 = vsub.f32 %v491_v24, %v132_v3 }
  0x53   :  { %v169_v12 = vmul.f32 %v145_v4, %v70_v62  ;;  %v170_v13 = vmul.f32 %v146_v5, %v71_v63  ;;  %v171_v14 = vmul.f32 %v147_v6, %v72_v1  ;;  %v172_v15 = vmul.f32 %v148_v7, %v73_v2  ;;  %v357_v16 = vpop.eup %356 }
  0x54   :  { %v153_v17 = vmul.f32 %v135_v8, %v70_v62  ;;  %v154_v18 = vmul.f32 %v136_v9, %v71_v63  ;;  %v155_v19 = vmul.f32 %v137_v10, %v72_v1  ;;  %v156_v20 = vmul.f32 %v138_v11, %v73_v2  ;;  %v359_v25 = vpop.eup %358  ;;  %v77_v2 = vld [vmem:[#allocation6 + $0xe] sm:$0x3] }
  0x55   :  { %v177_v26 = vsub.f32 1.0, %v169_v12  ;;  %v178_v27 = vsub.f32 1.0, %v170_v13  ;;  %v179_v28 = vsub.f32 1.0, %v171_v14  ;;  %v180_v21 = vsub.f32 1.0, %v172_v15 }
  0x56   :  { %v161_v29 = vsub.f32 0.0, %v153_v17  ;;  %v162_v22 = vsub.f32 0.0, %v154_v18  ;;  %v163_v30 = vsub.f32 0.0, %v155_v19  ;;  %v164_v23 = vsub.f32 0.0, %v156_v20 }
  0x57   :  { %v185_v35 = vmul.f32 %v177_v26, %v177_v26  ;;  %v186_v24 = vmul.f32 %v178_v27, %v178_v27  ;;  %v187_v36 = vmul.f32 %v179_v28, %v179_v28  ;;  %v188_v37 = vmul.f32 %v180_v21, %v180_v21 }
  0x58   :  { %v134_v38 = vmul.f32 0.6931472, %v357_v16  ;;  %v149_v39 = vmul.f32 %v359_v25, %v345_v48  ;;  %v150_v40 = vmul.f32 %v359_v25, %v347_v50  ;;  %v151_v41 = vmul.f32 %v359_v25, %v349_v52  ;;  %v75_v52 = vld [vmem:[#allocation6 + $0xa] sm:$0x3] }
  0x59   :  { %v193_v42 = vmul.f32 %v185_v35, %v161_v29  ;;  %v194_v43 = vmul.f32 %v186_v24, %v162_v22  ;;  %v195_v44 = vmul.f32 %v187_v36, %v163_v30  ;;  %v196_v45 = vmul.f32 %v188_v37, %v164_v23 }
  0x5a   :  { %v139_v47 = vsub.f32 %v497_v31, %v134_v38  ;;  %v140_v49 = vsub.f32 %v499_v32, %v134_v38  ;;  %v141_v51 = vsub.f32 %v501_v33, %v134_v38  ;;  %v142_v53 = vsub.f32 %v503_v34, %v134_v38  ;;  %v76_v31 = vld [vmem:[#allocation6 + $0xc] sm:$0x3] }
  0x5b   :  { %v203_v54 = vsel %vm78_vm0, %v193_v42, 0.0  ;;  %v210_v56 = vsel %vm78_vm0, %v194_v43, 0.0  ;;  %v217_v48 = vsel %vm78_vm0, %v195_v44, 0.0  ;;  %v224_v50 = vsel %vm78_vm0, %v196_v45, 0.0  ;;  %v201_v42 = vld [vmem:[#allocation2] sm:$0xf] }
  0x5c   :  { %v204_v57 = vrot.slane %v203_v54, 4  ;;  %v211_v58 = vrot.slane %v210_v56, 4  ;;  %v218_v59 = vrot.slane %v217_v48, 4  ;;  %v225_v60 = vrot.slane %v224_v50, 4 }
  0x5d   :  { %v152_v32 = vmul.f32 %v359_v25, %v515_v55  ;;  %v157_v33 = vmul.f32 %v139_v47, %v74_v46  ;;  %v158_v61 = vmul.f32 %v140_v49, %v75_v52  ;;  %v159_v34 = vmul.f32 %v141_v51, %v76_v31 }
  0x5e   :  { %v205_v62 = vadd.f32 %v204_v57, %v203_v54  ;;  %v212_v63 = vadd.f32 %v211_v58, %v210_v56  ;;  %v219_v0 = vadd.f32 %v218_v59, %v217_v48  ;;  %v226_v1 = vadd.f32 %v225_v60, %v224_v50 }
  0x5f   :  { %v160_v3 = vmul.f32 %v142_v53, %v77_v2  ;;  %v165_v4 = vsub.f32 0.0, %v157_v33  ;;  %v166_v5 = vsub.f32 0.0, %v158_v61  ;;  %v167_v6 = vsub.f32 0.0, %v159_v34 }
  0x60   :  { %v206_v7 = vrot.slane %v205_v62, 2  ;;  %v213_v8 = vrot.slane %v212_v63, 2  ;;  %v220_v9 = vrot.slane %v219_v0, 2  ;;  %v227_v10 = vrot.slane %v226_v1, 2 }
  0x61   :  { %v168_v11 = vsub.f32 0.0, %v160_v3  ;;  %v173_v55 = vmul.f32 %v149_v39, %v74_v46  ;;  %v174_v12 = vmul.f32 %v150_v40, %v75_v52  ;;  %v175_v13 = vmul.f32 %v151_v41, %v76_v31 }
  0x62   :  { %v207_v14 = vadd.f32 %v206_v7, %v205_v62  ;;  %v214_v15 = vadd.f32 %v213_v8, %v212_v63  ;;  %v221_v16 = vadd.f32 %v220_v9, %v219_v0  ;;  %v228_v17 = vadd.f32 %v227_v10, %v226_v1  ;;  %v202_v10 = vld [vmem:[#allocation2 + $0x4] sm:$0xf] }
  0x63   :  { %v176_v18 = vmul.f32 %v152_v32, %v77_v2  ;;  %v181_v19 = vsub.f32 1.0, %v173_v55  ;;  %v182_v20 = vsub.f32 1.0, %v174_v12  ;;  %v183_v25 = vsub.f32 1.0, %v175_v13 }
  0x64   :  { %v208_v26 = vrot.slane %v207_v14, 1  ;;  %v215_v27 = vrot.slane %v214_v15, 1  ;;  %v222_v28 = vrot.slane %v221_v16, 1  ;;  %v229_v21 = vrot.slane %v228_v17, 1 }
  0x65   :  { %v184_v29 = vsub.f32 1.0, %v176_v18  ;;  %v189_v22 = vmul.f32 %v181_v19, %v181_v19  ;;  %v190_v30 = vmul.f32 %v182_v20, %v182_v20  ;;  %v191_v23 = vmul.f32 %v183_v25, %v183_v25 }
  0x66   :  { %v209_v35 = vadd.f32 %v208_v26, %v207_v14  ;;  %v216_v24 = vadd.f32 %v215_v27, %v214_v15  ;;  %v223_v36 = vadd.f32 %v222_v28, %v221_v16  ;;  %v230_v37 = vadd.f32 %v229_v21, %v228_v17 }
  0x67   :  { %v192_v38 = vmul.f32 %v184_v29, %v184_v29  ;;  %v197_v39 = vmul.f32 %v189_v22, %v165_v4  ;;  %v198_v40 = vmul.f32 %v190_v30, %v166_v5  ;;  %v199_v41 = vmul.f32 %v191_v23, %v167_v6 }
  0x68   :  { %v268_v43 = vsel %vm267_vm1, %v216_v24, %v209_v35  ;;  %v296_v17 = vlaneseq }
  0x69   :  { %v270_v44 = vsel %vm269_vm2, %v223_v36, %v268_v43  ;;  %v200_v45 = vmul.f32 %v192_v38, %v168_v11  ;;  %v231_v46 = vsel %vm78_vm0, %v197_v39, 0.0  ;;  %v238_v47 = vsel %vm78_vm0, %v198_v40, 0.0 }
  0x6a   :  { %v272_v49 = vsel %vm271_vm3, %v230_v37, %v270_v44  ;;  %v232_v51 = vrot.slane %v231_v46, 4  ;;  %v239_v53 = vrot.slane %v238_v47, 4  ;;  %v245_v54 = vsel %vm78_vm0, %v199_v41, 0.0 }
  0x6b   :  { %v278_v56 = vadd.f32 %v272_v49, %v201_v42  ;;  %v246_v48 = vrot.slane %v245_v54, 4  ;;  %v252_v50 = vsel %vm78_vm0, %v200_v45, 0.0  ;;  %v297_v18 = vand.u32 127, %v296_v17 }
  0x6c   :  { %v233_v52 = vadd.f32 %v232_v51, %v231_v46  ;;  %v240_v57 = vadd.f32 %v239_v53, %v238_v47  ;;  %v253_v58 = vrot.slane %v252_v50, 4  ;;  %v299_v19 = vshrl.u32 %v296_v17, 7 }
  0x6d   :  { %280 = vst [vmem:[#allocation2] sm:$0xf] %v278_v56  ;;  %v247_v59 = vadd.f32 %v246_v48, %v245_v54 }
  0x6e   :  { %v234_v60 = vrot.slane %v233_v52, 2  ;;  %v241_v31 = vrot.slane %v240_v57, 2  ;;  %v254_v32 = vadd.f32 %v253_v58, %v252_v50  ;;  %v300_v25 = vsub.s32 %v297_v18, %v299_v19 }
  0x6f   :  { %v248_v33 = vrot.slane %v247_v59, 2 }
  0x70   :  { %v235_v61 = vadd.f32 %v234_v60, %v233_v52  ;;  %v242_v34 = vadd.f32 %v241_v31, %v240_v57  ;;  %v255_v62 = vrot.slane %v254_v32, 2 }
  0x71   :  { %v249_v63 = vadd.f32 %v248_v33, %v247_v59 }
  0x72   :  { %v236_v0 = vrot.slane %v235_v61, 1  ;;  %v243_v1 = vrot.slane %v242_v34, 1  ;;  %v256_v2 = vadd.f32 %v255_v62, %v254_v32 }
  0x73   :  { %v250_v3 = vrot.slane %v249_v63, 1 }
  0x74   :  { %v285_v4 = vld [vmem:[#allocation2] sm:$0xf]  ;;  %v237_v5 = vadd.f32 %v236_v0, %v235_v61  ;;  %v244_v6 = vadd.f32 %v243_v1, %v242_v34  ;;  %v257_v7 = vrot.slane %v256_v2, 1 }
  0x75   :  { %v288_v8 = vsel %vm287_vm4, %v285_v4, 0.0  ;;  %v251_v9 = vadd.f32 %v250_v3, %v249_v63 }
  0x76   :  { %289 = vadd.xlane.f32.xlu0 %v288_v8  ;;  %v258_v11 = vadd.f32 %v257_v7, %v256_v2  ;;  %v273_v55 = vsel %vm267_vm1, %v244_v6, %v237_v5 }
  0x77   :  { %v274_v12 = vsel %vm269_vm2, %v251_v9, %v273_v55 }
  0x78   :  { %v275_v13 = vsel %vm271_vm3, %v258_v11, %v274_v12 }
  0x79   :  { %v279_v14 = vadd.f32 %v275_v13, %v202_v10 }
  0x7b   :  { %281 = vst [vmem:[#allocation2 + $0x4] sm:$0xf] %v279_v14 }
  0x82   :  { %v286_v15 = vld [vmem:[#allocation2 + $0x4] sm:$0xf] }
  0x83   :  { %v291_v16 = vsel %vm287_vm4, %v286_v15, 0.0 }
  0x84   :  { %292 = vadd.xlane.f32.xlu0 %v291_v16 }
 0x103   :  { %v290_v20 = vpop.xlane.xlu0 %289 }
 0x104   :  { %v301_v27 = vrot.slane %v290_v20, %v300_v25 }
 0x111   :  { %v293_v26 = vpop.xlane.xlu0 %292 }
 0x112   :  { %v305_v28 = vrot.slane %v293_v26, %v300_v25 }
 0x114   :  { %v306_v21 = vsel %vm267_vm1, %v305_v28, %v301_v27 }
 0x115   :  { %309 = vst.msk [vmem:[#allocation8] sm:$0x3] %vm308_vm5, %v306_v21 }
 0x116   :  { %415 = shalt.err (!%p412_p6)
}
 0x117   :  { %s416_s10 = scalar_lea.hbm %s560_s2, 32 }
 0x118   :  { %p417_p7 = scmp.ne.s32.totalorder %s560_s2, %s416_s10  ;;  %p420_p8 = scmp.lt.u32.totalorder %s416_s10, %s560_s2 }
 0x11a   :  { %p422_p9 = pnand %p420_p8, %p417_p7 }
 0x11c   :  { %425 = shalt.err (!%p422_p9)
}
 0x11d   :  { %319 = dma.vmem_to_hbm [thread:$0]  %s317_s6, 32, %s560_s2, [#allocation5]  }
 0x11e   :  { %430 = dma.done.wait [#allocation5], 32  }
 0x11f   :  { %431 = vsyncadd [#allocation5], 4294967264 }
 0x120   :  { %323 = vsyncpa [#allocation4], 1 }
 0x121   :  { %324 = vsyncpa [#allocation7], 1 }
 0x122   :  { %325 = vsyncpa [#allocation5], 1 }

</bundles_post_ra>
